<compile_context>
chip_gen: v7x
topology: tpu7x:2x2x1
jax: 0.10.0
libtpu: 0.0.40
codegen_flags: <defaults>
</compile_context>

<pallas_src>
import functools
import re

import jax
import jax.numpy as jnp
from jax.experimental import pallas as pl
from jax.experimental.pallas import tpu as pltpu


def _h_swish_jnp(x):
    """Pure-jnp h_swish: fused/ragged-shape fallback and test reference."""
    return x * jnp.clip(x + 3.0, 0.0, 6.0) * (1.0 / 6.0)


def _h_swish_kernel(x_ref, o_ref, *, compute_dtype):
    x = x_ref[...].astype(compute_dtype)
    # relu6(x + 3) / 6  -> clip(x + 3, 0, 6) * (1/6)
    hs = jnp.clip(x + 3.0, 0.0, 6.0) * (1.0 / 6.0)
    o_ref[...] = (x * hs).astype(o_ref.dtype)


# minimum sublane count per 32-bit-packed tile, by element size in bytes
_SUBLANE_BY_ITEMSIZE = {4: 8, 2: 16, 1: 32}


def _tpu_config():
    """Returns (tensorcores_per_chip, target_block_bytes, vmem_limit_bytes,
    native_low_precision_compute)."""
    # Unknown hardware: v7x-safe block/limit sizing, no forced 2-way split.
    num_tc, block_bytes, vmem_limit, native_lowp = 1, 4 << 20, 32 << 20, True
    try:
        kind = jax.devices()[0].device_kind.lower()
    except Exception:
        return num_tc, block_bytes, vmem_limit, native_lowp
    m = re.search(r"v?(\d+)", kind)
    gen = int(m.group(1)) if m else 0
    if gen >= 7:
        # v7x: 2 TCs/chip, 64 MiB VMEM per TC -> keep 4x block (in+out,
        # double-buffered) comfortably inside a 32 MiB scoped limit.
        return 2, 4 << 20, 32 << 20, True
    if gen == 6:
        # v6e: 1 TC, 128 MiB VMEM, bf16 VPU -> bigger blocks, higher limit.
        return 1, 8 << 20, 64 << 20, True
    if gen == 5:
        # v5e: 1 TC, 128 MiB VMEM, no bf16 VPU -> compute sub-32-bit in f32.
        return 1, 8 << 20, 64 << 20, False
    return num_tc, block_bytes, vmem_limit, native_lowp


def h_swish(x: jax.Array, *, use_pallas: bool = True) -> jax.Array:
    """Elementwise hard-swish: x * relu6(x + 3) / 6. Accepts any shape."""
    dtype = x.dtype
    n = x.size
    if (not use_pallas or n == 0
            or not jnp.issubdtype(dtype, jnp.floating)
            or n % 128 != 0):
        # Ragged / degenerate shapes: skip the kernel entirely instead of
        # paying full-tensor pad + slice copies around it.
        return _h_swish_jnp(x)

    itemsize = jnp.dtype(dtype).itemsize
    sublane = _SUBLANE_BY_ITEMSIZE.get(itemsize, 8)
    num_tc, target_block_bytes, vmem_limit, native_lowp = _tpu_config()
    compute_dtype = dtype if (itemsize == 4 or native_lowp) else jnp.float32

    # Lane-dense last dim: widest power-of-two slab that divides n exactly
    # (zero-copy reshape, coarse DMA, unmasked full-width stores).
    lane = 128
    for cand in (1024, 512, 256, 128):
        if n % cand == 0:
            lane = cand
            break
    rows = n // lane
    x2d = x.reshape(rows, lane)

    # Multi-MiB blocks: mem-bound elementwise wants few, large grid steps.
    block_rows = (target_block_bytes // (lane * itemsize)) // sublane * sublane
    block_rows = max(block_rows, sublane)
    if rows <= block_rows:
        if num_tc >= 2 and rows >= 2 * sublane:
            # 2-TC part (v7x): split a single-block input in two so the
            # 'parallel' grid axis can shard across both TensorCores.
            half = -(-rows // 2)                           # ceil(rows / 2)
            block_rows = -(-half // sublane) * sublane     # round up to sublane
        else:
            # 1-TC part (v5e/v6e) or tiny input: one full-extent block; a
            # split would just add a serial ~0.35 us grid step.
            block_rows = rows
    elif num_tc >= 2:
        # 2-TC part: best-effort even block count so neither core gets a
        # straggler tail block.
        nb = pl.cdiv(rows, block_rows)
        if nb % 2:
            per_block = -(-rows // (nb + 1))               # ceil
            block_rows = max(sublane, -(-per_block // sublane) * sublane)
    grid = (pl.cdiv(rows, block_rows),)

    kernel = functools.partial(_h_swish_kernel, compute_dtype=compute_dtype)
    out2d = pl.pallas_call(
        kernel,
        out_shape=jax.ShapeDtypeStruct((rows, lane), dtype),
        grid_spec=pltpu.PrefetchScalarGridSpec(
            num_scalar_prefetch=0,
            grid=grid,
            in_specs=[pl.BlockSpec((block_rows, lane), lambda i: (i, 0))],
            out_specs=pl.BlockSpec((block_rows, lane), lambda i: (i, 0)),
        ),
        # In-place update (shapes/dtypes match): no bandwidth change, but it
        # halves peak HBM footprint and avoids a second full-size buffer.
        input_output_aliases={0: 0},
        compiler_params=pltpu.CompilerParams(
            dimension_semantics=("parallel",),
            vmem_limit_bytes=vmem_limit,
        ),
    )(x2d)
    return out2d.reshape(x.shape)


if __name__ == "__main__":
    key = jax.random.PRNGKey(0)

    # NCHW, matching PyTorch conv-activation usage in MobileNetV3.
    x = jax.random.normal(key, (2, 4, 16, 16), dtype=jnp.float32) * 4.0
    out = h_swish(x)
    jax.block_until_ready(out)
    ref = _h_swish_jnp(x)
    assert out.shape == x.shape and out.dtype == x.dtype
    assert jnp.allclose(out, ref, atol=1e-6, rtol=1e-6)

    # bf16 path (native bf16 compute on v6e/v7x, f32 upcast on v5e).
    xb = (jax.random.normal(jax.random.PRNGKey(2), (2, 8, 8, 16)) * 4.0).astype(jnp.bfloat16)
    outb = h_swish(xb)
    jax.block_until_ready(outb)
    refb = _h_swish_jnp(xb.astype(jnp.float32))
    assert outb.shape == xb.shape and outb.dtype == xb.dtype
    assert jnp.allclose(outb.astype(jnp.float32), refb, atol=5e-2, rtol=5e-2)

    # Non-128-aligned numel: falls back to the fused pure-jnp path (no
    # pad/slice full-tensor copies around the kernel).
    x2 = jax.random.normal(jax.random.PRNGKey(1), (2, 3, 17, 19), dtype=jnp.float32) * 4.0
    out2 = h_swish(x2)
    jax.block_until_ready(out2)
    assert out2.shape == x2.shape and out2.dtype == x2.dtype
    assert jnp.allclose(out2, _h_swish_jnp(x2), atol=1e-6, rtol=1e-6)

    print("KERNEL_OK")
</pallas_src>

<mosaic_0001>
module attributes {stable_mosaic.version = 11 : i64} {
  func.func @_h_swish_kernel(%arg0: i32, %arg1: memref<2x1024xf32, #tpu.memory_space<vmem>>, %arg2: memref<2x1024xf32, #tpu.memory_space<vmem>>) attributes {dimension_semantics = [#tpu.dimension_semantics<parallel>], iteration_bounds = array<i64: 1>, scalar_prefetch = 0 : i64, scratch_operands = 0 : i64, tpu.core_type = #tpu.core_type<tc>, window_params = [{transform_indices = @transform_0, window_bounds = array<i64: 2, 1024>}, {transform_indices = @transform_1, window_bounds = array<i64: 2, 1024>}]} {
    %c0 = arith.constant 0 : index
    %c0_0 = arith.constant 0 : index
    %0 = vector.load %arg1[%c0, %c0_0] : memref<2x1024xf32, #tpu.memory_space<vmem>>, vector<2x1024xf32>
    %cst = arith.constant 3.000000e+00 : f32
    %1 = vector.broadcast %cst : f32 to vector<2x1024xf32>
    %2 = arith.addf %0, %1 : vector<2x1024xf32>
    %cst_1 = arith.constant 0.000000e+00 : f32
    %cst_2 = arith.constant 6.000000e+00 : f32
    %3 = vector.broadcast %cst_1 : f32 to vector<2x1024xf32>
    %4 = arith.maximumf %3, %2 : vector<2x1024xf32>
    %5 = vector.broadcast %cst_2 : f32 to vector<2x1024xf32>
    %6 = arith.minimumf %5, %4 : vector<2x1024xf32>
    %cst_3 = arith.constant 0.166666672 : f32
    %7 = vector.broadcast %cst_3 : f32 to vector<2x1024xf32>
    %8 = arith.mulf %6, %7 : vector<2x1024xf32>
    %9 = arith.mulf %0, %8 : vector<2x1024xf32>
    %c0_4 = arith.constant 0 : index
    %c0_5 = arith.constant 0 : index
    %10 = vector.load %arg2[%c0_4, %c0_5] : memref<2x1024xf32, #tpu.memory_space<vmem>>, vector<2x1024xf32>
    tpu.vector_store %arg2[%c0_4, %c0_5], %9 {strides = array<i32>} : memref<2x1024xf32, #tpu.memory_space<vmem>>, vector<2x1024xf32>,
    return
  }
  func.func @transform_0(%arg0: i32) -> (i32, i32) {
    %c0_i32 = arith.constant 0 : i32
    %c0_i32_0 = arith.constant 0 : i32
    return %arg0, %c0_i32 : i32, i32
  }
  func.func @transform_1(%arg0: i32) -> (i32, i32) {
    %c0_i32 = arith.constant 0 : i32
    %c0_i32_0 = arith.constant 0 : i32
    return %arg0, %c0_i32 : i32, i32
  }
}

</mosaic_0001>

<bundles_post_ra>
// kernel: tpu_custom_call.1
= control target key start
LH: loop header
LB: loop body
LE: loop exit
PB: predicated region body
PF: predicated region fallthrough
CT: control target
= control target key end

     0   :  { %6 = vsyncpa [#allocation3], 0  ;;  %s136_s0 = inlined_call_operand.hbm [shape: f32[2,1024], index: 0, kind: input, shape index: {}, may-alias: {0,1}]   ;;  %s137_s1 = inlined_call_operand.hbm [shape: f32[2,1024], index: 1, kind: output, shape index: {}, may-alias: {0,1}]  }
   0x1   :  { %7 = vsyncpa [#allocation4], 0  ;;  %s100_s6 = smov [#allocation2]   ;;  %s52_s10 = scalar_lea.hbm %s136_s0, 256 }
   0x2   :  { %s14_s7 = sshll.u32 %s100_s6, 4  ;;  %p53_p0 = scmp.ne.s32.totalorder %s136_s0, %s52_s10  ;;  %s15_s7 = int_to_ptr.vmem [resolvable:$true] %s14_s7 }
   0x3   :  { %p56_p1 = scmp.lt.u32.totalorder %s52_s10, %s136_s0 }
   0x5   :  { %p58_p2 = pnand %p56_p1, %p53_p0 }
   0x7   :  { %61 = shalt.err (!%p58_p2)
}
   0x8   :  { %s62_s15 = scalar_lea.vmem %s15_s7, 256  ;;  %p67_p4 = scmp.lt.s32.totalorder %s15_s7, %s15_s7 }
   0x9   :  { %p63_p3 = scmp.ne.s32.totalorder %s15_s7, %s62_s15  ;;  %p68_p5 = scmp.lt.s32.totalorder %s62_s15, %s62_s15 }
   0xb   :  { %p69_p6 = por %p68_p5, %p67_p4 }
   0xd   :  { %p70_p7 = pnand %p69_p6, %p63_p3 }
   0xf   :  { %73 = shalt.err (!%p70_p7)
}
  0x10   :  { %17 = dma.hbm_to_vmem [thread:$0]  %s136_s0, 256, %s15_s7, [#allocation3]  }
  0x11   :  { %96 = dma.done.wait [#allocation3], 256  }
  0x12   :  { %97 = vsyncadd [#allocation3], 4294967040  ;;  %v21_v0 = vld [vmem:[#allocation2] sm:$0xff]  ;;  %v22_v1 = vld [vmem:[#allocation2 + $0x8] sm:$0xff]  ;;  %s101_s18 = smov [#allocation5]  }
  0x13   :  { %v23_v2 = vadd.f32 3.0, %v21_v0  ;;  %v24_v3 = vadd.f32 3.0, %v22_v1  ;;  %s41_s19 = sshll.u32 %s101_s18, 4  ;;  %s42_s19 = int_to_ptr.vmem [resolvable:$true] %s41_s19 }
  0x14   :  { %s74_s0 = scalar_lea.vmem %s42_s19, 256  ;;  %p79_p9 = scmp.lt.s32.totalorder %s42_s19, %s42_s19 }
  0x15   :  { %v25_v4 = vmax.f32 %v23_v2, 0.0  ;;  %v26_v5 = vmax.f32 %v24_v3, 0.0  ;;  %p75_p8 = scmp.ne.s32.totalorder %s42_s19, %s74_s0  ;;  %p80_p10 = scmp.lt.s32.totalorder %s74_s0, %s74_s0 }
  0x17   :  { %v27_v6 = vmin.f32 %v25_v4, 6.0  ;;  %v28_v7 = vmin.f32 %v26_v5, 6.0  ;;  %p81_p11 = por %p80_p10, %p79_p9 }
  0x19   :  { %v29_v8 = vmul.f32 0.16666667, %v27_v6  ;;  %v30_v9 = vmul.f32 0.16666667, %v28_v7  ;;  %p82_p12 = pnand %p81_p11, %p75_p8 }
  0x1b   :  { %v31_v10 = vmul.f32 %v29_v8, %v21_v0  ;;  %v32_v11 = vmul.f32 %v30_v9, %v22_v1 }
  0x1d   :  { %33 = vst [vmem:[#allocation5] sm:$0xff] %v31_v10  ;;  %34 = vst [vmem:[#allocation5 + $0x8] sm:$0xff] %v32_v11 }
  0x1e   :  { %85 = shalt.err (!%p82_p12)
}
  0x1f   :  { %s86_s22 = scalar_lea.hbm %s137_s1, 256 }
  0x20   :  { %p87_p13 = scmp.ne.s32.totalorder %s137_s1, %s86_s22  ;;  %p90_p0 = scmp.lt.u32.totalorder %s86_s22, %s137_s1 }
  0x22   :  { %p92_p1 = pnand %p90_p0, %p87_p13 }
  0x24   :  { %95 = shalt.err (!%p92_p1)
}
  0x25   :  { %44 = dma.vmem_to_hbm [thread:$0]  %s42_s19, 256, %s137_s1, [#allocation4]  }
  0x26   :  { %98 = dma.done.wait [#allocation4], 256  }
  0x27   :  { %99 = vsyncadd [#allocation4], 4294967040 }
  0x28   :  { %48 = vsyncpa [#allocation3], 1 }
  0x29   :  { %49 = vsyncpa [#allocation4], 1 }

</bundles_post_ra>
